<compile_context>
chip_gen: v5e
topology: v5e:2x2
jax: 0.10.0
libtpu: 0.0.40
codegen_flags: <defaults>
</compile_context>

<pallas_src>
import jax
import jax.numpy as jnp
from jax.experimental import pallas as pl
from jax.experimental.pallas import tpu as pltpu


def _rnn_kernel(proj_ref, whh_ref, wfc_ref, bfc_ref, out_ref):
    """Serial RNN recurrence + fused Linear head, single invocation.

    proj_ref : (T, B, H)  precomputed x @ W_ih^T + (b_ih + b_hh), time-major
    whh_ref  : (H, H)     W_hh^T
    wfc_ref  : (H, O)     W_fc^T
    bfc_ref  : (1, O)     b_fc
    out_ref  : (B, O)     logits from the last time step
    """
    T = proj_ref.shape[0]
    whh = whh_ref[...]                              # resident across all steps

    # h0 == 0  =>  first step is just tanh(proj[0]); skip the zero matmul.
    h = jnp.tanh(proj_ref[0])                       # (B, H)

    # Fully unrolled serial chain (T is a static Python int):
    #   h = tanh(proj[t] + h @ W_hh^T)
    # proj_ref[t] is a leading-axis pick of a (T, B, H) block -> no sublane
    # extraction work adjacent to the latency-bound chain.
    for t in range(1, T):
        h = jnp.tanh(proj_ref[t]
                     + jnp.dot(h, whh, preferred_element_type=jnp.float32))
    # TODO(synk): for long sequences on v7x, pin W_hh in the MXU weight regs
    # once via pltpu.matmul_push_rhs/matmul_acc_lhs/matmul_pop instead of
    # re-pushing the (H, H) RHS every unrolled step; marginal at T=8.

    # fc(output[:, -1, :])
    out_ref[...] = (jnp.dot(h, wfc_ref[...], preferred_element_type=jnp.float32)
                    + bfc_ref[...]).astype(out_ref.dtype)


def prepare_params(w_ih, w_hh, b_ih, b_hh, w_fc, b_fc):
    """One-time layout prep (hoisted off the per-inference path)."""
    H = w_hh.shape[0]
    O = w_fc.shape[0]
    return (
        w_ih.T.astype(jnp.float32),                            # (D_in, H)
        w_hh.T.astype(jnp.float32),                            # (H, H)
        (b_ih + b_hh).reshape(1, 1, H).astype(jnp.float32),    # fused bias
        w_fc.T.astype(jnp.float32),                            # (H, O)
        b_fc.reshape(1, O).astype(jnp.float32),                # (1, O)
    )


@jax.jit
def model_rnn_forward(x, wih_t, whh_t, bias, wfc_t, bfc):
    """x: (B, T, D_in) -- PyTorch batch_first layout.  Returns (B, O)."""
    B, T, _ = x.shape
    O = wfc_t.shape[1]
    assert T >= 1, "Model_RNN requires at least one time step"

    # Time-independent input projection, done by XLA: the batch_first ->
    # time-major transpose + matmul + fused bias collapse into one fusion and
    # the (T, B, H) result arrives in the kernel lane/sublane-dense.
    proj = jnp.einsum("btd,dh->tbh", x.astype(jnp.float32), wih_t,
                      preferred_element_type=jnp.float32) + bias

    vmem = pl.BlockSpec(memory_space=pltpu.MemorySpace.VMEM)
    return pl.pallas_call(
        _rnn_kernel,
        out_shape=jax.ShapeDtypeStruct((B, O), jnp.float32),
        in_specs=[vmem, vmem, vmem, vmem],
        out_specs=vmem,
        # Gridless & fully VMEM-resident on purpose (working set < 50 KB).
        # TODO(synk): if B grows, add a ("parallel",) batch grid axis so the
        # second TensorCore on v7x can split the batch; pointless at B=2.
    )(proj, whh_t, wfc_t, bfc)


def _reference_forward(x, w_ih, w_hh, b_ih, b_hh, w_fc, b_fc):
    """Pure-JAX reference matching torch.nn.RNN(batch_first=True) + Linear."""
    B = x.shape[0]
    H = w_hh.shape[0]
    h = jnp.zeros((B, H), jnp.float32)
    for t in range(x.shape[1]):
        h = jnp.tanh(x[:, t, :] @ w_ih.T + b_ih + h @ w_hh.T + b_hh)
    return h @ w_fc.T + b_fc


if __name__ == "__main__":
    # Module hyperparameters (from the PyTorch script).
    input_dim, hidden_dim, layer_dim, output_dim = 13, 40, 1, 10
    batch, seq = 2, 8

    key = jax.random.PRNGKey(0)
    k_x, k1, k2, k3, k4, k5, k6 = jax.random.split(key, 7)

    # Deterministic synthetic parameters (PyTorch-style uniform init bound).
    bound = 1.0 / jnp.sqrt(hidden_dim)
    uni = lambda k, shape: jax.random.uniform(
        k, shape, jnp.float32, minval=-bound, maxval=bound)

    x = jax.random.normal(k_x, (batch, seq, input_dim), jnp.float32)
    w_ih = uni(k1, (hidden_dim, input_dim))
    w_hh = uni(k2, (hidden_dim, hidden_dim))
    b_ih = uni(k3, (hidden_dim,))
    b_hh = uni(k4, (hidden_dim,))
    w_fc = uni(k5, (output_dim, hidden_dim))
    b_fc = uni(k6, (output_dim,))

    # One-time parameter prep, then the lean per-call path.
    params = prepare_params(w_ih, w_hh, b_ih, b_hh, w_fc, b_fc)
    out = model_rnn_forward(x, *params)
    out = jax.block_until_ready(out)

    ref = _reference_forward(x, w_ih, w_hh, b_ih, b_hh, w_fc, b_fc)
    assert out.shape == (batch, output_dim)
    assert jnp.allclose(out, ref, atol=1e-5, rtol=1e-5), (out, ref)

    print("KERNEL_OK")
</pallas_src>

<mosaic_0001>
module attributes {stable_mosaic.version = 11 : i64} {
  func.func @_rnn_kernel(%arg0: memref<8x2x40xf32, #tpu.memory_space<vmem>>, %arg1: memref<40x40xf32, #tpu.memory_space<vmem>>, %arg2: memref<40x10xf32, #tpu.memory_space<vmem>>, %arg3: memref<1x10xf32, #tpu.memory_space<vmem>>, %arg4: memref<2x10xf32, #tpu.memory_space<vmem>>) attributes {dimension_semantics = [], scalar_prefetch = 0 : i64, scratch_operands = 0 : i64, tpu.core_type = #tpu.core_type<tc>} {
    %c0 = arith.constant 0 : index
    %c0_0 = arith.constant 0 : index
    %0 = vector.load %arg1[%c0, %c0_0] : memref<40x40xf32, #tpu.memory_space<vmem>>, vector<40x40xf32>
    %c0_1 = arith.constant 0 : index
    %c0_2 = arith.constant 0 : index
    %c0_3 = arith.constant 0 : index
    %1 = vector.load %arg0[%c0_1, %c0_2, %c0_3] : memref<8x2x40xf32, #tpu.memory_space<vmem>>, vector<1x2x40xf32>
    %2 = vector.shape_cast %1 : vector<1x2x40xf32> to vector<2x40xf32>
    %3 = math.tanh %2 : vector<2x40xf32>
    %c1 = arith.constant 1 : index
    %c0_4 = arith.constant 0 : index
    %c0_5 = arith.constant 0 : index
    %4 = vector.load %arg0[%c1, %c0_4, %c0_5] : memref<8x2x40xf32, #tpu.memory_space<vmem>>, vector<1x2x40xf32>
    %5 = vector.shape_cast %4 : vector<1x2x40xf32> to vector<2x40xf32>
    %cst = arith.constant dense<0.000000e+00> : vector<2x40xf32>
    %6 = tpu.matmul %3, %0, %cst {dimension_numbers = #tpu.dot_dimension_numbers<[1], [0], [0], [1], [0, 0, 1, 1], [], []>} : vector<2x40xf32>, vector<40x40xf32>, vector<2x40xf32> -> vector<2x40xf32>
    %7 = arith.addf %5, %6 : vector<2x40xf32>
    %8 = math.tanh %7 : vector<2x40xf32>
    %c2 = arith.constant 2 : index
    %c0_6 = arith.constant 0 : index
    %c0_7 = arith.constant 0 : index
    %9 = vector.load %arg0[%c2, %c0_6, %c0_7] : memref<8x2x40xf32, #tpu.memory_space<vmem>>, vector<1x2x40xf32>
    %10 = vector.shape_cast %9 : vector<1x2x40xf32> to vector<2x40xf32>
    %cst_8 = arith.constant dense<0.000000e+00> : vector<2x40xf32>
    %11 = tpu.matmul %8, %0, %cst_8 {dimension_numbers = #tpu.dot_dimension_numbers<[1], [0], [0], [1], [0, 0, 1, 1], [], []>} : vector<2x40xf32>, vector<40x40xf32>, vector<2x40xf32> -> vector<2x40xf32>
    %12 = arith.addf %10, %11 : vector<2x40xf32>
    %13 = math.tanh %12 : vector<2x40xf32>
    %c3 = arith.constant 3 : index
    %c0_9 = arith.constant 0 : index
    %c0_10 = arith.constant 0 : index
    %14 = vector.load %arg0[%c3, %c0_9, %c0_10] : memref<8x2x40xf32, #tpu.memory_space<vmem>>, vector<1x2x40xf32>
    %15 = vector.shape_cast %14 : vector<1x2x40xf32> to vector<2x40xf32>
    %cst_11 = arith.constant dense<0.000000e+00> : vector<2x40xf32>
    %16 = tpu.matmul %13, %0, %cst_11 {dimension_numbers = #tpu.dot_dimension_numbers<[1], [0], [0], [1], [0, 0, 1, 1], [], []>} : vector<2x40xf32>, vector<40x40xf32>, vector<2x40xf32> -> vector<2x40xf32>
    %17 = arith.addf %15, %16 : vector<2x40xf32>
    %18 = math.tanh %17 : vector<2x40xf32>
    %c4 = arith.constant 4 : index
    %c0_12 = arith.constant 0 : index
    %c0_13 = arith.constant 0 : index
    %19 = vector.load %arg0[%c4, %c0_12, %c0_13] : memref<8x2x40xf32, #tpu.memory_space<vmem>>, vector<1x2x40xf32>
    %20 = vector.shape_cast %19 : vector<1x2x40xf32> to vector<2x40xf32>
    %cst_14 = arith.constant dense<0.000000e+00> : vector<2x40xf32>
    %21 = tpu.matmul %18, %0, %cst_14 {dimension_numbers = #tpu.dot_dimension_numbers<[1], [0], [0], [1], [0, 0, 1, 1], [], []>} : vector<2x40xf32>, vector<40x40xf32>, vector<2x40xf32> -> vector<2x40xf32>
    %22 = arith.addf %20, %21 : vector<2x40xf32>
    %23 = math.tanh %22 : vector<2x40xf32>
    %c5 = arith.constant 5 : index
    %c0_15 = arith.constant 0 : index
    %c0_16 = arith.constant 0 : index
    %24 = vector.load %arg0[%c5, %c0_15, %c0_16] : memref<8x2x40xf32, #tpu.memory_space<vmem>>, vector<1x2x40xf32>
    %25 = vector.shape_cast %24 : vector<1x2x40xf32> to vector<2x40xf32>
    %cst_17 = arith.constant dense<0.000000e+00> : vector<2x40xf32>
    %26 = tpu.matmul %23, %0, %cst_17 {dimension_numbers = #tpu.dot_dimension_numbers<[1], [0], [0], [1], [0, 0, 1, 1], [], []>} : vector<2x40xf32>, vector<40x40xf32>, vector<2x40xf32> -> vector<2x40xf32>
    %27 = arith.addf %25, %26 : vector<2x40xf32>
    %28 = math.tanh %27 : vector<2x40xf32>
    %c6 = arith.constant 6 : index
    %c0_18 = arith.constant 0 : index
    %c0_19 = arith.constant 0 : index
    %29 = vector.load %arg0[%c6, %c0_18, %c0_19] : memref<8x2x40xf32, #tpu.memory_space<vmem>>, vector<1x2x40xf32>
    %30 = vector.shape_cast %29 : vector<1x2x40xf32> to vector<2x40xf32>
    %cst_20 = arith.constant dense<0.000000e+00> : vector<2x40xf32>
    %31 = tpu.matmul %28, %0, %cst_20 {dimension_numbers = #tpu.dot_dimension_numbers<[1], [0], [0], [1], [0, 0, 1, 1], [], []>} : vector<2x40xf32>, vector<40x40xf32>, vector<2x40xf32> -> vector<2x40xf32>
    %32 = arith.addf %30, %31 : vector<2x40xf32>
    %33 = math.tanh %32 : vector<2x40xf32>
    %c7 = arith.constant 7 : index
    %c0_21 = arith.constant 0 : index
    %c0_22 = arith.constant 0 : index
    %34 = vector.load %arg0[%c7, %c0_21, %c0_22] : memref<8x2x40xf32, #tpu.memory_space<vmem>>, vector<1x2x40xf32>
    %35 = vector.shape_cast %34 : vector<1x2x40xf32> to vector<2x40xf32>
    %cst_23 = arith.constant dense<0.000000e+00> : vector<2x40xf32>
    %36 = tpu.matmul %33, %0, %cst_23 {dimension_numbers = #tpu.dot_dimension_numbers<[1], [0], [0], [1], [0, 0, 1, 1], [], []>} : vector<2x40xf32>, vector<40x40xf32>, vector<2x40xf32> -> vector<2x40xf32>
    %37 = arith.addf %35, %36 : vector<2x40xf32>
    %38 = math.tanh %37 : vector<2x40xf32>
    %c0_24 = arith.constant 0 : index
    %c0_25 = arith.constant 0 : index
    %39 = vector.load %arg2[%c0_24, %c0_25] : memref<40x10xf32, #tpu.memory_space<vmem>>, vector<40x10xf32>
    %cst_26 = arith.constant dense<0.000000e+00> : vector<2x10xf32>
    %40 = tpu.matmul %38, %39, %cst_26 {dimension_numbers = #tpu.dot_dimension_numbers<[1], [0], [0], [1], [0, 0, 1, 1], [], []>} : vector<2x40xf32>, vector<40x10xf32>, vector<2x10xf32> -> vector<2x10xf32>
    %c0_27 = arith.constant 0 : index
    %c0_28 = arith.constant 0 : index
    %41 = vector.load %arg3[%c0_27, %c0_28] : memref<1x10xf32, #tpu.memory_space<vmem>>, vector<1x10xf32>
    %42 = vector.broadcast %41 : vector<1x10xf32> to vector<2x10xf32>
    %43 = arith.addf %40, %42 : vector<2x10xf32>
    %c0_29 = arith.constant 0 : index
    %c0_30 = arith.constant 0 : index
    %44 = vector.load %arg4[%c0_29, %c0_30] : memref<2x10xf32, #tpu.memory_space<vmem>>, vector<2x10xf32>
    tpu.vector_store %arg4[%c0_29, %c0_30], %43 {strides = array<i32>} : memref<2x10xf32, #tpu.memory_space<vmem>>, vector<2x10xf32>,
    return
  }
}

</mosaic_0001>

<bundles_post_ra>
// kernel: model_rnn_forward.1
= control target key start
LH: loop header
LB: loop body
LE: loop exit
PB: predicated region body
PF: predicated region fallthrough
CT: control target
= control target key end

     0   :  { %s418_s0 = inlined_call_operand.vmem [shape: f32[8,2,40], index: 0, kind: input, shape index: {}]   ;;  %s419_s1 = inlined_call_operand.vmem [shape: f32[40,40], index: 1, kind: input, shape index: {}]   ;;  %s420_s2 = inlined_call_operand.vmem [shape: f32[40,10], index: 2, kind: input, shape index: {}]   ;;  %s421_s3 = inlined_call_operand.vmem [shape: f32[1,10], index: 3, kind: input, shape index: {}]   ;;  %s422_s4 = inlined_call_operand.hbm [shape: f32[2,10], index: 4, kind: output, shape index: {}]  }
   0x1   :  { %v22_v0 = vld [vmem:[%s419_s1 + $0x20] sm:$0xff]  ;;  %v21_v1 = vld [vmem:[%s419_s1 + $0x18] sm:$0xff]  ;;  %v20_v3 = vld [vmem:[%s419_s1 + $0x10] sm:$0xff] }
   0x2   :  { %42 = vmatpush.msra.mxu0 %v22_v0  ;;  %v23_v2 = vld [vmem:[%s418_s0] sm:$0x3]  ;;  %69 = vmatpush.msra.mxu1 %v22_v0 }
   0x3   :  { %282 = vtanh.f32 %v23_v2  ;;  %96 = vmatpush.msra.mxu2 %v22_v0  ;;  %123 = vmatpush.msra.mxu3 %v22_v0 }
   0x4   :  { %9 = vsyncpa [#allocation3], 0  ;;  %43 = vmatpush.msra.mxu0 %v21_v1  ;;  %70 = vmatpush.msra.mxu1 %v21_v1  ;;  %v19_v4 = vld [vmem:[%s419_s1 + $0x8] sm:$0xff]  ;;  %v18_v5 = vld [vmem:[%s419_s1] sm:$0xff]  ;;  %vm27_vm0 = vcmask 326656   ;;  %s324_s26 = smov [#allocation2]  }
   0x5   :  { %97 = vmatpush.msra.mxu2 %v21_v1  ;;  %124 = vmatpush.msra.mxu3 %v21_v1  ;;  %v265_v7 = vld [vmem:[%s418_s0 + $0x2] sm:$0x3]  ;;  %v267_v11 = vld [vmem:[%s418_s0 + $0x4] sm:$0x3]  ;;  %v269_v15 = vld [vmem:[%s418_s0 + $0x6] sm:$0x3] }
   0x6   :  { %44 = vmatpush.msra.mxu0 %v20_v3  ;;  %71 = vmatpush.msra.mxu1 %v20_v3  ;;  %v271_v19 = vld [vmem:[%s418_s0 + $0x8] sm:$0x3]  ;;  %v273_v23 = vld [vmem:[%s418_s0 + $0xa] sm:$0x3]  ;;  %v275_v27 = vld [vmem:[%s418_s0 + $0xc] sm:$0x3] }
   0x7   :  { %98 = vmatpush.msra.mxu2 %v20_v3  ;;  %125 = vmatpush.msra.mxu3 %v20_v3  ;;  %v219_v31 = vld [vmem:[%s420_s2 + $0x20] sm:$0xff]  ;;  %v218_v32 = vld [vmem:[%s420_s2 + $0x18] sm:$0xff]  ;;  %v217_v33 = vld [vmem:[%s420_s2 + $0x10] sm:$0xff]  ;;  %s254_s1 = sshll.u32 %s324_s26, 4  ;;  %s256_s28 = sshll.u32 %s422_s4, 4  ;;  %vm247_vm1 = vcmask 74752   ;;  %s255_s1 = int_to_ptr.vmem [resolvable:$true] %s254_s1  ;;  %s257_s28 = int_to_ptr.hbm [resolvable:$true] %s256_s28 }
   0x8   :  { %45 = vmatpush.msra.mxu0 %v19_v4  ;;  %72 = vmatpush.msra.mxu1 %v19_v4  ;;  %v216_v34 = vld [vmem:[%s420_s2 + $0x8] sm:$0xff]  ;;  %v215_v35 = vld [vmem:[%s420_s2] sm:$0xff] }
   0x9   :  { %v283_v6 = vpop.eup %282  ;;  %99 = vmatpush.msra.mxu2 %v19_v4  ;;  %126 = vmatpush.msra.mxu3 %v19_v4  ;;  %v277_v36 = vld [vmem:[%s418_s0 + $0xe] sm:$0x3]  ;;  %v281_v40 = vld [vmem:[%s421_s3] ss:$0 sm:$0xff] }
   0xa   :  { %46 = vmatpush.msra.mxu0 %v18_v5  ;;  %73 = vmatpush.msra.mxu1 %v18_v5 }
   0xb   :  { %266 = vmatmul.msk.f32.vlgmr.msra.gmra.mxu0 %vm27_vm0, %v283_v6  ;;  %100 = vmatpush.msra.mxu2 %v18_v5 }
   0xc   :  { %127 = vmatpush.msra.mxu3 %v18_v5  ;;  %150 = vmatpush.msrb.mxu0 %v22_v0 }
   0xd   :  { %177 = vmatpush.msrb.mxu1 %v22_v0  ;;  %204 = vmatpush.msrb.mxu2 %v22_v0 }
   0xe   :  { %151 = vmatpush.msrb.mxu0 %v21_v1  ;;  %238 = vmatpush.msrb.mxu3 %v219_v31 }
   0xf   :  { %178 = vmatpush.msrb.mxu1 %v21_v1  ;;  %205 = vmatpush.msrb.mxu2 %v21_v1 }
  0x10   :  { %152 = vmatpush.msrb.mxu0 %v20_v3  ;;  %239 = vmatpush.msrb.mxu3 %v218_v32 }
  0x11   :  { %179 = vmatpush.msrb.mxu1 %v20_v3  ;;  %206 = vmatpush.msrb.mxu2 %v20_v3 }
  0x12   :  { %153 = vmatpush.msrb.mxu0 %v19_v4  ;;  %240 = vmatpush.msrb.mxu3 %v217_v33 }
  0x13   :  { %180 = vmatpush.msrb.mxu1 %v19_v4  ;;  %207 = vmatpush.msrb.mxu2 %v19_v4 }
  0x14   :  { %154 = vmatpush.msrb.mxu0 %v18_v5  ;;  %241 = vmatpush.msrb.mxu3 %v216_v34 }
  0x15   :  { %181 = vmatpush.msrb.mxu1 %v18_v5  ;;  %208 = vmatpush.msrb.mxu2 %v18_v5 }
  0x16   :  { %242 = vmatpush.msrb.mxu3 %v215_v35 }
  0x88   :  { %v48_v8 = vpop.f32.mrf.mxu0 }
  0x89   :  { %v51_v9 = vadd.f32 %v265_v7, %v48_v8 }
  0x8b   :  { %284 = vtanh.f32 %v51_v9 }
  0x91   :  { %v285_v10 = vpop.eup %284 }
  0x92   :  { %268 = vmatmul.msk.f32.vlgmr.msra.gmra.mxu1 %vm27_vm0, %v285_v10 }
 0x10f   :  { %v75_v12 = vpop.f32.mrf.mxu1 }
 0x110   :  { %v78_v13 = vadd.f32 %v267_v11, %v75_v12 }
 0x112   :  { %286 = vtanh.f32 %v78_v13 }
 0x118   :  { %v287_v14 = vpop.eup %286 }
 0x119   :  { %270 = vmatmul.msk.f32.vlgmr.msra.gmra.mxu2 %vm27_vm0, %v287_v14 }
 0x19c   :  { %v102_v16 = vpop.f32.mrf.mxu2 }
 0x19d   :  { %v105_v17 = vadd.f32 %v269_v15, %v102_v16 }
 0x19f   :  { %288 = vtanh.f32 %v105_v17 }
 0x1a5   :  { %v289_v18 = vpop.eup %288 }
 0x1a6   :  { %272 = vmatmul.msk.f32.vlgmr.msra.gmra.mxu3 %vm27_vm0, %v289_v18 }
 0x229   :  { %v129_v20 = vpop.f32.mrf.mxu3 }
 0x22a   :  { %v132_v21 = vadd.f32 %v271_v19, %v129_v20 }
 0x22c   :  { %290 = vtanh.f32 %v132_v21 }
 0x232   :  { %v291_v22 = vpop.eup %290 }
 0x233   :  { %274 = vmatmul.msk.f32.vlgmr.msrb.gmra.mxu0 %vm27_vm0, %v291_v22 }
 0x2b0   :  { %v156_v24 = vpop.f32.mrf.mxu0 }
 0x2b1   :  { %v159_v25 = vadd.f32 %v273_v23, %v156_v24 }
 0x2b3   :  { %292 = vtanh.f32 %v159_v25 }
 0x2b9   :  { %v293_v26 = vpop.eup %292 }
 0x2ba   :  { %276 = vmatmul.msk.f32.vlgmr.msrb.gmra.mxu1 %vm27_vm0, %v293_v26 }
 0x337   :  { %v183_v28 = vpop.f32.mrf.mxu1 }
 0x338   :  { %v186_v29 = vadd.f32 %v275_v27, %v183_v28 }
 0x33a   :  { %294 = vtanh.f32 %v186_v29 }
 0x340   :  { %v295_v30 = vpop.eup %294 }
 0x341   :  { %278 = vmatmul.msk.f32.vlgmr.msrb.gmra.mxu2 %vm27_vm0, %v295_v30 }
 0x3c4   :  { %v210_v37 = vpop.f32.mrf.mxu2 }
 0x3c5   :  { %v213_v38 = vadd.f32 %v277_v36, %v210_v37 }
 0x3c7   :  { %296 = vtanh.f32 %v213_v38 }
 0x3cd   :  { %v297_v39 = vpop.eup %296 }
 0x3ce   :  { %279 = vmatmul.msk.f32.vlgmr.msrb.gmra.mxu3 %vm27_vm0, %v297_v39 }
 0x451   :  { %v244_v41 = vpop.f32.mrf.mxu3 }
 0x452   :  { %v245_v42 = vadd.f32 %v281_v40, %v244_v41 }
 0x454   :  { %248 = vst.msk [vmem:[#allocation2] sm:$0x3] %vm247_vm1, %v245_v42 }
 0x455   :  { %259 = dma.vmem_to_hbm [thread:$0]  %s255_s1, 32, %s257_s28, [#allocation3]  }
 0x456   :  { %322 = dma.done.wait [#allocation3], 32  }
 0x457   :  { %323 = vsyncadd [#allocation3], 4294967264 }
 0x458   :  { %264 = vsyncpa [#allocation3], 1 }

</bundles_post_ra>
